<compile_context>
chip_gen: v6e
topology: v6e:2x2x1
jax: 0.10.0
libtpu: 0.0.40
codegen_flags: <defaults>
</compile_context>

<pallas_src>
import math
import functools

import jax
import jax.numpy as jnp
from jax.experimental import pallas as pl
from jax.experimental.pallas import tpu as pltpu


# ---------------------------------------------------------------------------
# Kernels
# ---------------------------------------------------------------------------
def _linear_kernel_noreduce(x_ref, w_ref, b_ref, o_ref, *, apply_relu: bool):
    # Single K block: no accumulator scratch needed.
    # x_ref: (tm, K)  w_ref: (K, tn)  b_ref: (1, tn)  o_ref: (tm, tn)
    out = jnp.dot(x_ref[...], w_ref[...], preferred_element_type=jnp.float32)
    out = out + b_ref[...].astype(jnp.float32)
    if apply_relu:
        out = jnp.maximum(out, 0.0)
    o_ref[...] = out.astype(o_ref.dtype)


def _linear_kernel_reduce(x_ref, w_ref, b_ref, o_ref, acc_ref, *, apply_relu: bool):
    # x_ref: (tm, tk)  w_ref: (tk, tn)  b_ref: (1, tn)  o_ref: (tm, tn)
    # acc_ref: (tm, tn) f32 VMEM scratch, resident across the K ("arbitrary") axis.
    k = pl.program_id(2)

    @pl.when(k == 0)
    def _init():
        acc_ref[...] = jnp.zeros_like(acc_ref)

    acc_ref[...] += jnp.dot(
        x_ref[...], w_ref[...], preferred_element_type=jnp.float32
    )

    @pl.when(k == pl.num_programs(2) - 1)
    def _finalize():
        # Epilogue runs on otherwise-idle VPU slots: fuse bias + nonlinearity here.
        out = acc_ref[...] + b_ref[...].astype(jnp.float32)
        if apply_relu:
            out = jnp.maximum(out, 0.0)
        o_ref[...] = out.astype(o_ref.dtype)


# ---------------------------------------------------------------------------
# Generation-aware tiling
# ---------------------------------------------------------------------------
def _cdiv(a, b):
    return -(-a // b)


def _tpu_generation():
    try:
        kind = jax.devices()[0].device_kind.lower()
    except Exception:
        return "default"
    if "v7" in kind:
        return "v7x"
    if "v6" in kind:
        return "v6e"
    if "v5e" in kind or "v5 lite" in kind or "v5lite" in kind:
        return "v5e"
    return "default"


# gen -> (tm, tn, tk_max, vmem_limit_bytes, num_tensorcores)
_TILE_TABLE = {
    "v5e":     (512, 512, 1024, 64 << 20, 1),
    "v6e":     (1024, 2048, 1024, 96 << 20, 1),
    "v7x":     (512, 1024, 1024, 48 << 20, 2),
    "default": (512, 1024, 1024, 48 << 20, 1),
}


def _pick_tk(K, tk_max):
    """Pick the K tile so that K % tk == 0 whenever possible (no padding)."""
    if K <= tk_max:
        return K, False
    t = (tk_max // 128) * 128
    while t >= 128:
        if K % t == 0:
            return t, False
        t -= 128
    # Rare fallback: K > tk_max and K is not a multiple of 128 -> zero-pad K.
    return (tk_max // 128) * 128, True


# ---------------------------------------------------------------------------
# Wrapper
# ---------------------------------------------------------------------------
def linear_pallas(x, weight_kn, bias, *, apply_relu: bool = False,
                  mxu_dtype=jnp.bfloat16, tm=None, tn=None, tk=None):
    """y = x @ weight_kn + bias, optional fused ReLU.

    x:         (..., in_dim)
    weight_kn: (in_dim, out_dim)   -- pre-transposed, matmul-ready layout
    bias:      (out_dim,)
    mxu_dtype: dtype of the matmul inputs (default bf16; accumulation, bias and
               ReLU stay in f32).  Pass None to keep full input precision.
    """
    K, N = weight_kn.shape
    assert x.shape[-1] == K, "feature dim mismatch"
    lead = x.shape[:-1]
    M = int(math.prod(lead)) if lead else 1
    out_dtype = x.dtype

    x2 = x.reshape(M, K)
    w = weight_kn
    b2 = bias.reshape(1, N)

    if mxu_dtype is not None:
        # no-op when the caller already stores weights/activations in mxu_dtype
        x2 = x2.astype(mxu_dtype)
        w = w.astype(mxu_dtype)

    # --- tile selection ----------------------------------------------------
    gen = _tpu_generation()
    d_tm, d_tn, d_tk, vmem_limit, num_tc = _TILE_TABLE.get(gen, _TILE_TABLE["default"])
    tm = d_tm if tm is None else tm
    tn = d_tn if tn is None else tn
    tk_max = d_tk if tk is None else tk

    # Full-dim blocks are always layout-legal; tiled blocks keep the (8, 128)
    # divisibility rule (tm mult of 8, tn/tk mult of 128 when tiled).
    tm = M if M <= tm else tm
    tn = N if N <= tn else tn

    tk, need_pad = _pick_tk(K, tk_max)
    Kp = K
    if need_pad:
        Kp = _cdiv(K, tk) * tk
        # Zero-pad K so stale values never enter valid rows' accumulation.
        x2 = jnp.pad(x2, ((0, 0), (0, Kp - K)))
        w = jnp.pad(w, ((0, Kp - K), (0, 0)))
    kt = Kp // tk

    # 2-TensorCore chips (v7x): avoid a degenerate (1,1,...) parallel grid.
    if num_tc >= 2 and _cdiv(M, tm) * _cdiv(N, tn) == 1:
        if N > 128:
            tn = 128 * _cdiv(_cdiv(N, 2), 128)
        elif M > 8:
            tm = 8 * _cdiv(_cdiv(M, 2), 8)

    m_blocks = _cdiv(M, tm)
    n_blocks = _cdiv(N, tn)

    in_itemsize = jnp.dtype(x2.dtype).itemsize
    out_itemsize = jnp.dtype(out_dtype).itemsize
    b_itemsize = jnp.dtype(b2.dtype).itemsize
    cost = pl.CostEstimate(
        flops=2 * M * N * K,
        transcendentals=0,
        # x is re-read once per N block; W once per M block.
        bytes_accessed=(M * Kp * in_itemsize) * n_blocks
        + (Kp * N * in_itemsize) * m_blocks
        + M * N * out_itemsize
        + N * b_itemsize * m_blocks,
    )
    compiler_params = pltpu.CompilerParams(
        dimension_semantics=("parallel", "parallel") + (("arbitrary",) if kt > 1 else ()),
        vmem_limit_bytes=vmem_limit,
    )

    if kt == 1:
        # ---------------- no-reduction fast path (2-D grid) ----------------
        kernel = functools.partial(_linear_kernel_noreduce, apply_relu=apply_relu)
        grid_spec = pltpu.PrefetchScalarGridSpec(
            num_scalar_prefetch=0,
            grid=(m_blocks, n_blocks),
            in_specs=[
                pl.BlockSpec((tm, tk), lambda i, j: (i, 0)),   # x tile (full K)
                pl.BlockSpec((tk, tn), lambda i, j: (0, j)),   # weight tile
                pl.BlockSpec((1, tn), lambda i, j: (0, j)),    # bias tile
            ],
            out_specs=pl.BlockSpec((tm, tn), lambda i, j: (i, j)),
            scratch_shapes=[],
        )
    else:
        # ---------------- K-reduction path (3-D grid, f32 accumulator) -----
        kernel = functools.partial(_linear_kernel_reduce, apply_relu=apply_relu)
        grid_spec = pltpu.PrefetchScalarGridSpec(
            num_scalar_prefetch=0,
            grid=(m_blocks, n_blocks, kt),
            in_specs=[
                pl.BlockSpec((tm, tk), lambda i, j, k: (i, k)),   # x tile
                pl.BlockSpec((tk, tn), lambda i, j, k: (k, j)),   # weight tile
                pl.BlockSpec((1, tn), lambda i, j, k: (0, j)),    # bias tile
            ],
            out_specs=pl.BlockSpec((tm, tn), lambda i, j, k: (i, j)),
            scratch_shapes=[pltpu.VMEM((tm, tn), jnp.float32)],
        )

    out = pl.pallas_call(
        kernel,
        out_shape=jax.ShapeDtypeStruct((M, N), out_dtype),
        grid_spec=grid_spec,
        compiler_params=compiler_params,
        cost_estimate=cost,
    )(x2, w, b2)

    return out.reshape(*lead, N)


# ---------------------------------------------------------------------------
# Module counterpart (deterministic init mirroring the PyTorch block):
#   - bias initialized to zeros (bias=False path uses the same zeros bias:
#     numerically identical, avoids a second kernel variant)
#   - weight via variance-scaling (fan_in, uniform) with nonlinearity gain
#   - weight stored pre-transposed (in_dim, out_dim) and cast to mxu_dtype
#     (default bf16) ONCE at init, keeping the hot path free of transpose /
#     cast HBM passes.  Pass mxu_dtype=None for full-f32 weights and matmul.
# ---------------------------------------------------------------------------
class LinearPallas:
    def __init__(self, in_dim, out_dim, *, bias=True, dropout=0.0,
                 nonlinearity=None, key=None, mxu_dtype=jnp.bfloat16):
        self.dropout = dropout
        # TODO(synk): training-mode nn.Dropout2d (channel-wise dropout mask) not
        # implemented; inference-mode dropout is identity, which is what we compute.
        self.nonlinearity = nonlinearity  # None or "relu"
        self.mxu_dtype = mxu_dtype
        gain = math.sqrt(2.0) if nonlinearity == "relu" else 1.0
        if key is None:
            key = jax.random.PRNGKey(0)
        bound = gain * math.sqrt(3.0 / in_dim)
        w = jax.random.uniform(key, (in_dim, out_dim), dtype=jnp.float32,
                               minval=-bound, maxval=bound)
        self.weight_kn = w if mxu_dtype is None else w.astype(mxu_dtype)
        self.bias = jnp.zeros((out_dim,), jnp.float32)

    def __call__(self, x):
        return linear_pallas(
            x, self.weight_kn, self.bias,
            apply_relu=(self.nonlinearity == "relu"),
            mxu_dtype=self.mxu_dtype,
        )


if __name__ == "__main__":
    key = jax.random.PRNGKey(0)
    k_x, k_w, k_x2, k_w2 = jax.random.split(key, 4)

    # --- small test: exact f32 path, single grid step ------------------------
    batch, seq, in_dim, out_dim = 2, 8, 32, 64
    x = jax.random.normal(k_x, (batch, seq, in_dim), dtype=jnp.float32)
    module = LinearPallas(in_dim, out_dim, bias=True, dropout=0.0,
                          nonlinearity="relu", key=k_w, mxu_dtype=None)
    y = jax.block_until_ready(module(x))
    ref = jnp.maximum(x @ module.weight_kn + module.bias, 0.0)
    assert y.shape == (batch, seq, out_dim)
    assert jnp.allclose(y, ref, atol=1e-5, rtol=1e-5)

    # --- medium test: bf16 default path, exercises K reduction / tiling ------
    batch2, seq2, in_dim2, out_dim2 = 3, 128, 1280, 384   # K>tk_max, tk=640, kt=2
    x_big = jax.random.normal(k_x2, (batch2, seq2, in_dim2), dtype=jnp.float32)
    module2 = LinearPallas(in_dim2, out_dim2, bias=True, dropout=0.0,
                           nonlinearity="relu", key=k_w2)   # default bf16 MXU inputs
    y_big = jax.block_until_ready(module2(x_big))
    # Reference with matching precision: bf16 inputs, f32 accumulation.
    xb = x_big.astype(jnp.bfloat16).astype(jnp.float32)
    wb = module2.weight_kn.astype(jnp.float32)
    ref_big = jnp.maximum(xb @ wb + module2.bias, 0.0)
    assert y_big.shape == (batch2, seq2, out_dim2)
    assert jnp.allclose(y_big, ref_big, atol=2e-3, rtol=2e-3)

    print("KERNEL_OK")
</pallas_src>

<mosaic_0001>
module attributes {stable_mosaic.version = 11 : i64} {
  func.func @_linear_kernel_noreduce(%arg0: i32, %arg1: i32, %arg2: memref<16x32xf32, #tpu.memory_space<vmem>>, %arg3: memref<32x64xf32, #tpu.memory_space<vmem>>, %arg4: memref<1x64xf32, #tpu.memory_space<vmem>>, %arg5: memref<16x64xf32, #tpu.memory_space<vmem>>) attributes {dimension_semantics = [#tpu.dimension_semantics<parallel>, #tpu.dimension_semantics<parallel>], iteration_bounds = array<i64: 1, 1>, scalar_prefetch = 0 : i64, scratch_operands = 0 : i64, tpu.core_type = #tpu.core_type<tc>, window_params = [{transform_indices = @transform_0, window_bounds = array<i64: 16, 32>}, {transform_indices = @transform_1, window_bounds = array<i64: 32, 64>}, {transform_indices = @transform_2, window_bounds = array<i64: 1, 64>}, {transform_indices = @transform_3, window_bounds = array<i64: 16, 64>}]} {
    %c0 = arith.constant 0 : index
    %c0_0 = arith.constant 0 : index
    %0 = vector.load %arg2[%c0, %c0_0] : memref<16x32xf32, #tpu.memory_space<vmem>>, vector<16x32xf32>
    %c0_1 = arith.constant 0 : index
    %c0_2 = arith.constant 0 : index
    %1 = vector.load %arg3[%c0_1, %c0_2] : memref<32x64xf32, #tpu.memory_space<vmem>>, vector<32x64xf32>
    %cst = arith.constant dense<0.000000e+00> : vector<16x64xf32>
    %2 = tpu.matmul %0, %1, %cst {dimension_numbers = #tpu.dot_dimension_numbers<[1], [0], [0], [1], [0, 0, 1, 1], [], []>} : vector<16x32xf32>, vector<32x64xf32>, vector<16x64xf32> -> vector<16x64xf32>
    %c0_3 = arith.constant 0 : index
    %c0_4 = arith.constant 0 : index
    %3 = vector.load %arg4[%c0_3, %c0_4] : memref<1x64xf32, #tpu.memory_space<vmem>>, vector<1x64xf32>
    %4 = vector.broadcast %3 : vector<1x64xf32> to vector<16x64xf32>
    %5 = arith.addf %2, %4 : vector<16x64xf32>
    %cst_5 = arith.constant 0.000000e+00 : f32
    %6 = vector.broadcast %cst_5 : f32 to vector<16x64xf32>
    %7 = arith.maximumf %5, %6 : vector<16x64xf32>
    %c0_6 = arith.constant 0 : index
    %c0_7 = arith.constant 0 : index
    %8 = vector.load %arg5[%c0_6, %c0_7] : memref<16x64xf32, #tpu.memory_space<vmem>>, vector<16x64xf32>
    tpu.vector_store %arg5[%c0_6, %c0_7], %7 {strides = array<i32>} : memref<16x64xf32, #tpu.memory_space<vmem>>, vector<16x64xf32>,
    return
  }
  func.func @transform_0(%arg0: i32, %arg1: i32) -> (i32, i32) {
    %c0_i32 = arith.constant 0 : i32
    %c0_i32_0 = arith.constant 0 : i32
    return %arg0, %c0_i32 : i32, i32
  }
  func.func @transform_1(%arg0: i32, %arg1: i32) -> (i32, i32) {
    %c0_i32 = arith.constant 0 : i32
    %c0_i32_0 = arith.constant 0 : i32
    return %c0_i32, %arg1 : i32, i32
  }
  func.func @transform_2(%arg0: i32, %arg1: i32) -> (i32, i32) {
    %c0_i32 = arith.constant 0 : i32
    %c0_i32_0 = arith.constant 0 : i32
    return %c0_i32, %arg1 : i32, i32
  }
  func.func @transform_3(%arg0: i32, %arg1: i32) -> (i32, i32) {
    %c0_i32 = arith.constant 0 : i32
    return %arg0, %arg1 : i32, i32
  }
}

</mosaic_0001>

<bundles_post_ra>
// kernel: tpu_custom_call.1
= control target key start
LH: loop header
LB: loop body
LE: loop exit
PB: predicated region body
PF: predicated region fallthrough
CT: control target
= control target key end

     0   :  { %8 = vsyncpa [#allocation3], 0  ;;  %s300_s0 = inlined_call_operand.hbm [shape: f32[16,32], index: 0, kind: input, shape index: {}]   ;;  %s301_s1 = inlined_call_operand.hbm [shape: f32[32,64], index: 1, kind: input, shape index: {}]   ;;  %s302_s2 = inlined_call_operand.vmem [shape: f32[1,64], index: 2, kind: input, shape index: {}]   ;;  %s303_s3 = inlined_call_operand.hbm [shape: f32[16,64], index: 3, kind: output, shape index: {}]  }
   0x1   :  { %9 = vsyncpa [#allocation6], 0 }
   0x2   :  { %10 = vsyncpa [#allocation4], 0  ;;  %s252_s12 = smov [#allocation2]  }
   0x3   :  { %s16_s13 = sshll.u32 %s252_s12, 4  ;;  %s17_s13 = int_to_ptr.vmem [resolvable:$true] %s16_s13 }
   0x4   :  { %s194_s14 = scalar_lea.vmem %s17_s13, 256  ;;  %p199_p1 = scmp.lt.s32.totalorder %s17_s13, %s17_s13 }
   0x5   :  { %p195_p0 = scmp.ne.s32.totalorder %s17_s13, %s194_s14  ;;  %p200_p2 = scmp.lt.s32.totalorder %s194_s14, %s194_s14 }
   0x7   :  { %p201_p3 = por %p200_p2, %p199_p1 }
   0x9   :  { %p202_p4 = pnand %p201_p3, %p195_p0 }
   0xb   :  { %205 = shalt.err (!%p202_p4)
}
   0xc   :  { %s253_s15 = smov 128   ;;  %s254_s16 = smov 8  }
   0xd   :  { %22 = dma.hbm_to_vmem [thread:$0]  %s300_s0, 256, %s17_s13, [#allocation3], %s253_s15, %s253_s15, %s254_s16  }
   0xe   :  { %s255_s19 = smov [#allocation5]  }
   0xf   :  { %s28_s20 = sshll.u32 %s255_s19, 4  ;;  %s29_s20 = int_to_ptr.vmem [resolvable:$true] %s28_s20 }
  0x10   :  { %s214_s21 = scalar_lea.vmem %s29_s20, 512  ;;  %p219_p6 = scmp.lt.s32.totalorder %s29_s20, %s29_s20 }
  0x11   :  { %p215_p5 = scmp.ne.s32.totalorder %s29_s20, %s214_s21  ;;  %p220_p7 = scmp.lt.s32.totalorder %s214_s21, %s214_s21 }
  0x13   :  { %p221_p8 = por %p220_p7, %p219_p6 }
  0x15   :  { %p222_p9 = pnand %p221_p8, %p215_p5 }
  0x17   :  { %225 = shalt.err (!%p222_p9)
}
  0x18   :  { %34 = dma.hbm_to_vmem [thread:$0]  %s301_s1, 512, %s29_s20, [#allocation6], %s253_s15, %s253_s15, %s254_s16  }
  0x19   :  { %246 = dma.done.wait [#allocation3], 256  }
  0x1a   :  { %247 = vsyncadd [#allocation3], 4294967040 }
  0x1b   :  { %248 = dma.done.wait [#allocation6], 512  }
  0x1c   :  { %249 = vsyncadd [#allocation6], 4294966784  ;;  %vm56_vm0 = vcmask 261120   ;;  %v48_v0 = vld [vmem:[#allocation5 + $0x18] sm:$0xff]  ;;  %v47_v1 = vld [vmem:[#allocation5 + $0x10] sm:$0xff]  ;;  %vm140_vm1 = vcmask 523264  }
  0x1d   :  { %170 = vmatprep.subr.mxu0 %v48_v0  ;;  %v43_v2 = vld [vmem:[#allocation2] sm:$0xff]  ;;  %v46_v3 = vld [vmem:[#allocation5 + $0x8] sm:$0xff]  ;;  %v45_v4 = vld [vmem:[#allocation5] sm:$0xff]  ;;  %s256_s24 = smov [#allocation7]  }
  0x1e   :  { %171 = vmatpush3.msra.mxu0 %v48_v0  ;;  %178 = vmatprep.mubr.msk.f32.mxu0 %vm56_vm0, %v43_v2  ;;  %v44_v5 = vld [vmem:[#allocation2 + $0x8] sm:$0xff]  ;;  %v161_v6 = vld [vmem:[%s302_s2] ss:$0 sm:$0xff]  ;;  %s148_s25 = sshll.u32 %s256_s24, 4  ;;  %s149_s25 = int_to_ptr.vmem [resolvable:$true] %s148_s25 }
  0x1f   :  { %172 = vmatprep.subr.mxu0 %v47_v1  ;;  %s226_s26 = scalar_lea.vmem %s149_s25, 256  ;;  %p231_p11 = scmp.lt.s32.totalorder %s149_s25, %s149_s25 }
  0x20   :  { %173 = vmatpush3.msra.mxu0 %v47_v1  ;;  %p227_p10 = scmp.ne.s32.totalorder %s149_s25, %s226_s26  ;;  %p232_p12 = scmp.lt.s32.totalorder %s226_s26, %s226_s26 }
  0x21   :  { %174 = vmatprep.subr.mxu0 %v46_v3 }
  0x22   :  { %175 = vmatpush3.msra.mxu0 %v46_v3  ;;  %p233_p13 = por %p232_p12, %p231_p11 }
  0x23   :  { %176 = vmatprep.subr.mxu0 %v45_v4 }
  0x24   :  { %177 = vmatpush3.msra.mxu0 %v45_v4  ;;  %p234_p0 = pnand %p233_p13, %p227_p10 }
  0x25   :  { %179 = vmatmul.mubr.msk.f32.vlgmr.msra.gmra.mxu0 %vm56_vm0, %v44_v5 }
  0xe5   :  { %v180_v7 = vpop.f32.mrf.mxu0 }
  0xe6   :  { %v135_v8 = vadd.f32 %v180_v7, %v161_v6 }
  0xe7   :  { %v129_v9 = vpop.f32.mrf.mxu0 }
  0xe8   :  { %v139_v10 = vmax.f32 %v135_v8, 0.0  ;;  %v130_v11 = vadd.f32 %v161_v6, %v129_v9 }
  0xea   :  { %v138_v12 = vmax.f32 %v130_v11, 0.0  ;;  %142 = vst.msk [vmem:[#allocation7 + $0x8] sm:$0xff] %vm140_vm1, %v139_v10 }
  0xec   :  { %141 = vst.msk [vmem:[#allocation7] sm:$0xff] %vm140_vm1, %v138_v12 }
  0xed   :  { %237 = shalt.err (!%p234_p0)
}
  0xee   :  { %154 = dma.vmem_to_hbm [thread:$0]  %s149_s25, 256, %s303_s3, [#allocation4], %s253_s15, %s253_s15, %s254_s16  }
  0xef   :  { %250 = dma.done.wait [#allocation4], 256  }
  0xf0   :  { %251 = vsyncadd [#allocation4], 4294967040 }
  0xf1   :  { %158 = vsyncpa [#allocation3], 1 }
  0xf2   :  { %159 = vsyncpa [#allocation6], 1 }
  0xf3   :  { %160 = vsyncpa [#allocation4], 1 }

</bundles_post_ra>
